<compile_context>
chip_gen: v7x
topology: tpu7x:2x2x1
jax: 0.10.0
libtpu: 0.0.40
codegen_flags: <defaults>
</compile_context>

<pallas_src>
import jax
import jax.numpy as jnp
from jax.experimental import pallas as pl
from jax.experimental.pallas import tpu as pltpu


# ---------------------------------------------------------------------------
# Fused LM-head + verbalizer (project + mean-aggregate folded into weights)
#   out[m, n] = b[0, n] + sum_k x[m, k] * w[k, n]
#   x : (M, K)  bf16   mask-position hidden states (M = padded batch)
#   w : (K, N)  bf16   per-class averaged label-word columns (N = padded C)
#   b : (1, N)  f32    per-class averaged label-word bias
# Tiled over K; the f32 output block is the resident accumulator.
# ---------------------------------------------------------------------------

def _fused_cls_head_kernel(x_ref, w_ref, b_ref, o_ref):
    k = pl.program_id(0)

    @pl.when(k == 0)
    def _():
        # Initialize the resident accumulator with the bias (broadcast over M).
        o_ref[...] = jnp.broadcast_to(b_ref[...], o_ref.shape)

    o_ref[...] += jnp.dot(x_ref[...], w_ref[...],
                          preferred_element_type=jnp.float32)


def fused_cls_head(x, w, b, *, tk):
    M, K = x.shape
    K2, N = w.shape
    assert K == K2 and b.shape == (1, N) and K % tk == 0
    return pl.pallas_call(
        _fused_cls_head_kernel,
        out_shape=jax.ShapeDtypeStruct((M, N), jnp.float32),
        grid_spec=pltpu.PrefetchScalarGridSpec(
            num_scalar_prefetch=0,
            grid=(K // tk,),
            in_specs=[
                pl.BlockSpec((M, tk), lambda k: (0, k)),
                pl.BlockSpec((tk, N), lambda k: (k, 0)),
                pl.BlockSpec((1, N), lambda k: (0, 0)),
            ],
            # Same block index for every k -> output stays resident in VMEM
            # across the reduction axis and acts as the accumulator.
            out_specs=pl.BlockSpec((M, N), lambda k: (0, 0)),
        ),
        compiler_params=pltpu.CompilerParams(
            dimension_semantics=("arbitrary",)),   # K is a reduction axis
    )(x, w, b)


# ---------------------------------------------------------------------------
# Helpers
# ---------------------------------------------------------------------------

def _round_up(x, m):
    return ((x + m - 1) // m) * m


def _choose_tk(k_pad):
    # k_pad is always a multiple of 128.  Whole-K block when small; otherwise
    # stream lane-aligned K tiles through the double-buffered pipeline.
    if k_pad <= 512:
        return k_pad
    for cand in (512, 256, 128):
        if k_pad % cand == 0:
            return cand
    return k_pad


def _pad_to(a, shape, dtype):
    a = a.astype(dtype)
    if a.shape == tuple(shape):
        return a
    return jnp.zeros(shape, dtype).at[tuple(slice(0, s) for s in a.shape)].set(a)


# ---------------------------------------------------------------------------
# Parameters (synthetic plm + ManualVerbalizer config)
# ---------------------------------------------------------------------------

def init_params(key, vocab_size, hidden, num_classes, words_per_label):
    k_emb, k_w, k_b = jax.random.split(key, 3)
    embed = jax.random.normal(k_emb, (vocab_size, hidden), jnp.float32) * 0.02
    w_lm = jax.random.normal(k_w, (hidden, vocab_size), jnp.float32) * 0.02
    b_lm = jax.random.normal(k_b, (1, vocab_size), jnp.float32) * 0.02
    # Deterministic label words: class c uses tokens [10 + c*W .. 10 + c*W + W - 1]
    label_words_ids = (
        jnp.arange(num_classes * words_per_label, dtype=jnp.int32)
        .reshape(num_classes, words_per_label) + 10
    )
    return dict(embed=embed, w_lm=w_lm, b_lm=b_lm,
                label_words_ids=label_words_ids)


# ---------------------------------------------------------------------------
# PromptForClassification.forward
# ---------------------------------------------------------------------------

@jax.jit
def prompt_for_classification_forward(params, input_ids, loss_ids):
    B, S = input_ids.shape
    H = params["embed"].shape[1]
    label_ids = params["label_words_ids"]                                    # (C, W)
    C, W = label_ids.shape

    # --- template.process_batch / post_processing_outputs: identity ---

    # --- extract_at_mask, hoisted before the LM head (exact for this
    #     token-wise synthetic plm): grab the token at the single <mask>
    #     position and embed it -> (B, H).
    # TODO(synk): a real transformer plm mixes the full sequence via attention;
    #             there the encoder runs before this mask-row gather.
    mask_pos = jnp.argmax(loss_ids, axis=1)                                  # (B,)
    mask_tok = jnp.take_along_axis(input_ids, mask_pos[:, None], 1)[:, 0]    # (B,)
    hidden_at_mask = jnp.take(params["embed"], mask_tok, axis=0)             # (B, H)

    # --- verbalizer.project + aggregate, folded into the weights: the mean
    #     over label words is linear in the logits, so pre-average the
    #     gathered LM-head columns / bias per class (in f32, then cast).
    flat_ids = label_ids.reshape(-1)                                         # (C*W,)
    w_cls = jnp.take(params["w_lm"], flat_ids, axis=1).reshape(H, C, W).mean(axis=2)  # (H, C)
    b_cls = jnp.take(params["b_lm"], flat_ids, axis=1).reshape(1, C, W).mean(axis=2)  # (1, C)

    # --- pad M to a sublane multiple (>=8), K and N to lane-dense 128
    #     multiples so loads/stores are unmasked (zero padding is exact).
    M_pad = max(8, _round_up(B, 8))
    K_pad = _round_up(H, 128)
    N_pad = max(128, _round_up(C, 128))

    x = _pad_to(hidden_at_mask, (M_pad, K_pad), jnp.bfloat16)
    w = _pad_to(w_cls, (K_pad, N_pad), jnp.bfloat16)
    b = _pad_to(b_cls, (1, N_pad), jnp.float32)

    # --- fused LM-head matmul + bias + verbalizer (Pallas) ---
    out = fused_cls_head(x, w, b, tk=_choose_tk(K_pad))                      # (M_pad, N_pad) f32

    # label_words_logits after ManualVerbalizer aggregation: (B, C)
    return out[:B, :C]


# ---------------------------------------------------------------------------
# Pure-JAX references
# ---------------------------------------------------------------------------

def reference_forward_f32(params, input_ids, loss_ids):
    """Faithful f32 pipeline: full-sequence vocab logits -> extract_at_mask ->
    verbalizer project -> mean aggregate."""
    hidden = jnp.take(params["embed"], input_ids, axis=0)                    # (B, S, H)
    logits = hidden @ params["w_lm"] + params["b_lm"][0]                     # (B, S, V)
    mask_pos = jnp.argmax(loss_ids, axis=1)
    at_mask = jax.vmap(lambda l, p: l[p])(logits, mask_pos)                  # (B, V)
    C, W = params["label_words_ids"].shape
    lw = jnp.take(at_mask, params["label_words_ids"].reshape(-1), axis=1)    # (B, C*W)
    return lw.reshape(-1, C, W).mean(axis=2)                                 # (B, C)


def reference_forward_matched(params, input_ids, loss_ids):
    """Same math as the kernel path (pre-averaged bf16 weights, f32 accumulate)."""
    mask_pos = jnp.argmax(loss_ids, axis=1)
    mask_tok = jnp.take_along_axis(input_ids, mask_pos[:, None], 1)[:, 0]
    h = jnp.take(params["embed"], mask_tok, axis=0).astype(jnp.bfloat16)
    H = params["embed"].shape[1]
    C, W = params["label_words_ids"].shape
    flat_ids = params["label_words_ids"].reshape(-1)
    w_cls = (jnp.take(params["w_lm"], flat_ids, axis=1)
             .reshape(H, C, W).mean(axis=2).astype(jnp.bfloat16))
    b_cls = jnp.take(params["b_lm"], flat_ids, axis=1).reshape(1, C, W).mean(axis=2)
    return jnp.dot(h, w_cls, preferred_element_type=jnp.float32) + b_cls


if __name__ == "__main__":
    # Small shapes consistent with the forward:
    #   batch=2, seq=8, hidden=32, vocab=128, num_classes=4, 2 label words / class
    B, S, H, V, C, W = 2, 8, 32, 128, 4, 2

    key = jax.random.PRNGKey(0)
    k_params, k_ids = jax.random.split(key)
    params = init_params(k_params, vocab_size=V, hidden=H,
                         num_classes=C, words_per_label=W)

    input_ids = jax.random.randint(k_ids, (B, S), 0, V, dtype=jnp.int32)
    # exactly one <mask> (loss_ids == 1) per example
    mask_positions = jnp.array([3, 5], dtype=jnp.int32)
    loss_ids = jax.nn.one_hot(mask_positions, S, dtype=jnp.int32)            # (B, S)

    out = prompt_for_classification_forward(params, input_ids, loss_ids)
    out = jax.block_until_ready(out)
    assert out.shape == (B, C), out.shape

    # Tight check against a reference performing the identical bf16 math.
    ref_matched = reference_forward_matched(params, input_ids, loss_ids)
    assert jnp.allclose(out, ref_matched, atol=5e-4, rtol=1e-3), \
        "mismatch vs matched bf16 reference"

    # Loose check against the faithful full-precision, full-pipeline reference.
    ref_f32 = reference_forward_f32(params, input_ids, loss_ids)
    assert jnp.allclose(out, ref_f32, atol=1e-3, rtol=2e-2), \
        "mismatch vs f32 reference"

    print("KERNEL_OK")
</pallas_src>

<mosaic_0001>
module attributes {stable_mosaic.version = 11 : i64} {
  func.func @_fused_cls_head_kernel(%arg0: i32, %arg1: memref<8x128xbf16, #tpu.memory_space<vmem>>, %arg2: memref<128x128xbf16, #tpu.memory_space<vmem>>, %arg3: memref<1x128xf32, #tpu.memory_space<vmem>>, %arg4: memref<8x128xf32, #tpu.memory_space<vmem>>) attributes {dimension_semantics = [#tpu.dimension_semantics<arbitrary>], iteration_bounds = array<i64: 1>, scalar_prefetch = 0 : i64, scratch_operands = 0 : i64, tpu.core_type = #tpu.core_type<tc>, window_params = [{transform_indices = @transform_0, window_bounds = array<i64: 8, 128>}, {transform_indices = @transform_1, window_bounds = array<i64: 128, 128>}, {pipeline_mode = #tpu.pipeline_mode<synchronous>, transform_indices = @transform_2, window_bounds = array<i64: 1, 128>}, {pipeline_mode = #tpu.pipeline_mode<synchronous>, transform_indices = @transform_3, window_bounds = array<i64: 8, 128>}]} {
    %c0_i32 = arith.constant 0 : i32
    %0 = arith.cmpi eq, %arg0, %c0_i32 : i32
    %1 = arith.extui %0 : i1 to i32
    %c0_i32_0 = arith.constant 0 : i32
    %2 = arith.cmpi ne, %1, %c0_i32_0 : i32
    scf.if %2 {
      %c0_8 = arith.constant 0 : index
      %c0_9 = arith.constant 0 : index
      %9 = vector.load %arg3[%c0_8, %c0_9] : memref<1x128xf32, #tpu.memory_space<vmem>>, vector<1x128xf32>
      %10 = vector.shape_cast %9 : vector<1x128xf32> to vector<1x128xf32>
      %11 = vector.broadcast %10 : vector<1x128xf32> to vector<8x128xf32>
      %c0_10 = arith.constant 0 : index
      %c0_11 = arith.constant 0 : index
      %12 = vector.load %arg4[%c0_10, %c0_11] : memref<8x128xf32, #tpu.memory_space<vmem>>, vector<8x128xf32>
      tpu.vector_store %arg4[%c0_10, %c0_11], %11 {strides = array<i32>} : memref<8x128xf32, #tpu.memory_space<vmem>>, vector<8x128xf32>,
    } else {
    }
    %c0 = arith.constant 0 : index
    %c0_1 = arith.constant 0 : index
    %3 = vector.load %arg4[%c0, %c0_1] : memref<8x128xf32, #tpu.memory_space<vmem>>, vector<8x128xf32>
    %c0_2 = arith.constant 0 : index
    %c0_3 = arith.constant 0 : index
    %4 = vector.load %arg1[%c0_2, %c0_3] : memref<8x128xbf16, #tpu.memory_space<vmem>>, vector<8x128xbf16>
    %c0_4 = arith.constant 0 : index
    %c0_5 = arith.constant 0 : index
    %5 = vector.load %arg2[%c0_4, %c0_5] : memref<128x128xbf16, #tpu.memory_space<vmem>>, vector<128x128xbf16>
    %cst = arith.constant dense<0.000000e+00> : vector<8x128xf32>
    %6 = tpu.matmul %4, %5, %cst {dimension_numbers = #tpu.dot_dimension_numbers<[1], [0], [0], [1], [0, 0, 1, 1], [], []>} : vector<8x128xbf16>, vector<128x128xbf16>, vector<8x128xf32> -> vector<8x128xf32>
    %7 = arith.addf %3, %6 : vector<8x128xf32>
    %c0_6 = arith.constant 0 : index
    %c0_7 = arith.constant 0 : index
    %8 = vector.load %arg4[%c0_6, %c0_7] : memref<8x128xf32, #tpu.memory_space<vmem>>, vector<8x128xf32>
    tpu.vector_store %arg4[%c0_6, %c0_7], %7 {strides = array<i32>} : memref<8x128xf32, #tpu.memory_space<vmem>>, vector<8x128xf32>,
    return
  }
  func.func @transform_0(%arg0: i32) -> (i32, i32) {
    %c0_i32 = arith.constant 0 : i32
    %c0_i32_0 = arith.constant 0 : i32
    return %c0_i32, %arg0 : i32, i32
  }
  func.func @transform_1(%arg0: i32) -> (i32, i32) {
    %c0_i32 = arith.constant 0 : i32
    %c0_i32_0 = arith.constant 0 : i32
    return %arg0, %c0_i32 : i32, i32
  }
  func.func @transform_2(%arg0: i32) -> (i32, i32) {
    %c0_i32 = arith.constant 0 : i32
    %c0_i32_0 = arith.constant 0 : i32
    %c0_i32_1 = arith.constant 0 : i32
    return %c0_i32, %c0_i32_0 : i32, i32
  }
  func.func @transform_3(%arg0: i32) -> (i32, i32) {
    %c0_i32 = arith.constant 0 : i32
    %c0_i32_0 = arith.constant 0 : i32
    %c0_i32_1 = arith.constant 0 : i32
    return %c0_i32, %c0_i32_0 : i32, i32
  }
}

</mosaic_0001>

<bundles_post_ra>
// kernel: prompt_for_classification_forward.1
= control target key start
LH: loop header
LB: loop body
LE: loop exit
PB: predicated region body
PF: predicated region fallthrough
CT: control target
= control target key end

     0   :  { %v187_v0 = vmov 0.0   ;;  %vm188_vm0 = vmmov 0   ;;  %s242_s1 = inlined_call_operand.vmem [shape: bf16[128,128], index: 1, kind: input, shape index: {}]   ;;  %s243_s0 = inlined_call_operand.vmem [shape: bf16[8,128], index: 0, kind: input, shape index: {}]   ;;  %s244_s2 = inlined_call_operand.vmem [shape: f32[1,128], index: 2, kind: input, shape index: {}]   ;;  %s245_s3 = inlined_call_operand.vmem [shape: f32[8,128], index: 3, kind: output, shape index: {}]  }
   0x1   :  { %157 = vmatprep.subr.bf16.mxu0 %v187_v0  ;;  %v179_v1 = vld [vmem:[%s242_s1] sm:$0xff]   ;;  %173 = vmatprep.mubr.msk.bf16.mxu0 %vm188_vm0, %v187_v0  ;;  %v180_v2 = vld [vmem:[%s242_s1 + $0x8] sm:$0xff]   ;;  %v181_v3 = vld [vmem:[%s242_s1 + $0x10] sm:$0xff]  }
   0x2   :  { %158 = vmatpush3.bf16.msra.mxu0 %v179_v1  ;;  %v182_v4 = vld [vmem:[%s242_s1 + $0x18] sm:$0xff]   ;;  %v183_v5 = vld [vmem:[%s242_s1 + $0x20] sm:$0xff]   ;;  %v184_v6 = vld [vmem:[%s242_s1 + $0x28] sm:$0xff]  }
   0x3   :  { %159 = vmatprep.subr.bf16.mxu0 %v187_v0  ;;  %v185_v7 = vld [vmem:[%s242_s1 + $0x30] sm:$0xff]   ;;  %v186_v8 = vld [vmem:[%s242_s1 + $0x38] sm:$0xff]   ;;  %v28_v9 = vld [vmem:[%s243_s0] sm:$0xf] }
   0x4   :  { %v139_v10 = vld [vmem:[%s244_s2] ss:$0 sm:$0xff] }
   0x6   :  { %160 = vmatpush3.bf16.msra.mxu0 %v180_v2 }
   0x7   :  { %161 = vmatprep.subr.bf16.mxu0 %v187_v0 }
   0xa   :  { %162 = vmatpush3.bf16.msra.mxu0 %v181_v3 }
   0xb   :  { %163 = vmatprep.subr.bf16.mxu0 %v187_v0 }
   0xe   :  { %164 = vmatpush3.bf16.msra.mxu0 %v182_v4 }
   0xf   :  { %165 = vmatprep.subr.bf16.mxu0 %v187_v0 }
  0x12   :  { %166 = vmatpush3.bf16.msra.mxu0 %v183_v5 }
  0x13   :  { %167 = vmatprep.subr.bf16.mxu0 %v187_v0 }
  0x16   :  { %168 = vmatpush3.bf16.msra.mxu0 %v184_v6 }
  0x17   :  { %169 = vmatprep.subr.bf16.mxu0 %v187_v0 }
  0x1a   :  { %170 = vmatpush3.bf16.msra.mxu0 %v185_v7 }
  0x1b   :  { %171 = vmatprep.subr.bf16.mxu0 %v187_v0 }
  0x1e   :  { %172 = vmatpush3.bf16.msra.mxu0 %v186_v8 }
  0x21   :  { %174 = vmatmul.mubr.bf16.vlgmr.msra.gmra.mrb[0].mxu0 %v28_v9 }
  0xf4   :  { %v127_v11 = vpop.f32.mrb[0].mxu0 }
  0xf5   :  { %v133_v12 = vadd.f32 %v139_v10, %v127_v11  ;;  %v175_v13 = vpop.f32.mrb[1].mxu0 }
  0xf6   :  { %v130_v14 = vpop.f32.mrb[2].mxu0 }
  0xf7   :  { %134 = vst [vmem:[%s245_s3] sm:$0xff] %v133_v12  ;;  %v176_v15 = vpop.f32.mrb[3].mxu0 }

</bundles_post_ra>
